<compile_context>
chip_gen: v5e
topology: v5e:2x2
jax: 0.10.0
libtpu: 0.0.40
codegen_flags: <defaults>
</compile_context>

<pallas_src>
import jax
import jax.numpy as jnp
from jax.experimental import pallas as pl
from jax.experimental.pallas import tpu as pltpu

_TILE_MAX = 1024          # multiple of 256; keeps per-step VMEM ~8 MiB
_SORT_PATH_MIN = 16384    # above this N use the O(N log N) XLA sort path


def _plan_tiles(n):
    """Tile (multiple of 256, <= _TILE_MAX) and padded length (multiple of tile)."""
    tile = min(_TILE_MAX, max(256, ((n + 255) // 256) * 256))
    npad = ((n + tile - 1) // tile) * tile
    return tile, npad


def _vmem_limit_bytes():
    """Scoped-VMEM budget per generation: ~3/4 of physical, capped at 64 MiB.

    v7x has 64 MiB physical VMEM per TensorCore; v5e/v6e have 128 MiB.
    """
    try:
        cap = int(pltpu.get_tpu_info().vmem_capacity_bytes)
    except Exception:
        cap = 128 * 1024 * 1024
    return int(min(cap * 3 // 4, 64 * 1024 * 1024))


def _tpfp_kernel(w_ref, pred_col_ref, thr_row_ref, acc_ref):
    """acc[0, :] / acc[1, :] accumulate per-threshold TP / FP counts.

    Grid = (threshold blocks [parallel], sample blocks [reduction, last]).
    The output block index depends only on the threshold-block axis, so the
    (8, TL) accumulator block stays resident in VMEM across the whole sample
    reduction and is written back once per threshold block.
    """
    s = pl.program_id(1)

    @pl.when(s == 0)
    def _():
        acc_ref[...] = jnp.zeros_like(acc_ref)

    # ge[i, j] = 1 iff sample i is classified positive at threshold thr[j].
    # {0,1} is exact in bf16, so the MXU-accumulated counts are exact.
    # TODO(synk): on v6e/v7x a packed bf16 compare would halve VALU traffic but
    #   merges near-equal scores (shifts the selected EER point); keeping f32.
    ge = (pred_col_ref[...] >= thr_row_ref[...]).astype(jnp.bfloat16)  # (TS, TL)
    # TODO(synk): M=8 with 2 useful rows leaves the MXU feed-limited; if bundle
    #   dumps show the vector-extended slot binding, replace the dot with a VPU
    #   select + sublane-sum reduction and drop 6/8 of the accumulator RMW.
    acc_ref[...] += jnp.dot(w_ref[...], ge, preferred_element_type=jnp.float32)


@jax.jit
def _eer_pallas_path(label_flat, pred_flat):
    n = pred_flat.shape[0]
    tile, npad = _plan_tiles(n)
    pad = npad - n

    label_p = jnp.pad(label_flat, (0, pad))
    pred_p = jnp.pad(pred_flat, (0, pad))  # pad value irrelevant: padded samples
    # carry zero weights and padded threshold columns are masked below.

    valid = jnp.arange(npad) < n  # threshold-column validity

    # MXU weight tile: row 0 = positive weights, row 1 = negative weights,
    # rows 2..7 zero; padded samples get zero weight on both rows.
    w_pos = jnp.where(valid, label_p, 0.0)
    w_neg = jnp.where(valid, 1.0 - label_p, 0.0)
    w = jnp.zeros((8, npad), jnp.float32).at[0].set(w_pos).at[1].set(w_neg)
    w = w.astype(jnp.bfloat16)

    grid = (npad // tile, npad // tile)  # (threshold blocks, sample blocks)

    acc = pl.pallas_call(
        _tpfp_kernel,
        out_shape=jax.ShapeDtypeStruct((8, npad), jnp.float32),
        grid=grid,
        in_specs=[
            pl.BlockSpec((8, tile), lambda j, s: (0, s)),    # weights (sample tile)
            # TODO(synk): the (tile, 1) block lane-pads to 128 in VMEM (~1 MiB
            #   at tile=1024); an in-kernel (1,tile)->(tile,1) XLU transpose
            #   would reclaim it but risks a Mosaic relayout, so it stays.
            pl.BlockSpec((tile, 1), lambda j, s: (s, 0)),    # pred column (sample tile)
            pl.BlockSpec((1, tile), lambda j, s: (0, j)),    # thresholds (lane tile)
        ],
        out_specs=pl.BlockSpec((8, tile), lambda j, s: (0, j)),
        compiler_params=pltpu.CompilerParams(
            dimension_semantics=("parallel", "arbitrary"),
            vmem_limit_bytes=_vmem_limit_bytes(),
        ),
    )(w, pred_p.reshape(npad, 1), pred_p.reshape(1, npad))

    tp = acc[0, :]
    fp = acc[1, :]

    # ---- O(N) finalize in plain JAX (outside the kernel) -------------------
    n_pos = jnp.sum(w_pos)
    n_neg = jnp.sum(w_neg)
    # Guard single-class batches against NaN (sklearn would produce NaN; we
    # return a finite value instead of poisoning the running mean).
    n_pos_c = jnp.maximum(n_pos, 1.0)
    n_neg_c = jnp.maximum(n_neg, 1.0)

    tpr = tp / n_pos_c
    fpr = fp / n_neg_c
    fnr = 1.0 - tpr

    diff = jnp.where(valid, jnp.abs(fnr - fpr), jnp.inf)
    min_diff = jnp.min(diff)
    is_min = (diff == min_diff) & valid
    # Tie-break: among minimizers pick the highest threshold (first point in
    # roc_curve's descending-threshold ordering).
    # TODO(synk): sklearn roc_curve's drop_intermediate and exact nanargmin
    #   ordering are not reproduced in degenerate tie cases.
    t_sel = jnp.max(jnp.where(is_min, pred_p, -jnp.inf))
    sel = is_min & (pred_p == t_sel)
    eer_sum = jnp.sum(jnp.where(sel, 0.5 * (fpr + fnr), 0.0))
    eer_cnt = jnp.maximum(jnp.sum(sel.astype(jnp.float32)), 1.0)
    return eer_sum / eer_cnt


@jax.jit
def _eer_sort_path(label_flat, pred_flat):
    """O(N log N) pure-XLA EER for large N (argsort + cumulative TP/FP)."""
    n = pred_flat.shape[0]
    n_pos = jnp.sum(label_flat)
    n_neg = n - n_pos
    n_pos_c = jnp.maximum(n_pos, 1.0)
    n_neg_c = jnp.maximum(n_neg, 1.0)

    order = jnp.argsort(-pred_flat)
    p_s = pred_flat[order]
    l_s = label_flat[order]
    tp = jnp.cumsum(l_s)
    fp = jnp.cumsum(1.0 - l_s)
    tpr = tp / n_pos_c
    fpr = fp / n_neg_c
    fnr = 1.0 - tpr
    # Only the last index of a run of equal scores carries the correct
    # "pred >= t" counts; mask the others out of the argmin.
    distinct = jnp.concatenate([p_s[:-1] != p_s[1:], jnp.ones((1,), bool)])
    diff = jnp.where(distinct, jnp.abs(fnr - fpr), jnp.inf)
    i = jnp.argmin(diff)  # first minimizer = highest threshold (descending sort)
    return 0.5 * (fpr[i] + fnr[i])


class EERPallas:
    """Mirrors the PyTorch EER module: running mean of per-call EER values.

    The running sum is kept as a device scalar; no per-call host sync.
    """

    def __init__(self):
        self.score = 0.0
        self.count = 0.0

    def __call__(self, y_true, y_pred):
        y_true_flat = jnp.ravel(y_true).astype(jnp.float32)
        y_pred_flat = jnp.ravel(y_pred).astype(jnp.float32)
        n = y_pred_flat.shape[0]
        if n > _SORT_PATH_MIN:
            # Asymptotic win beats any tile tuning once N is large.
            eer_value = _eer_sort_path(y_true_flat, y_pred_flat)
        else:
            eer_value = _eer_pallas_path(y_true_flat, y_pred_flat)
        # Lazy device-side accumulation (no float()/host round-trip per call).
        self.score = self.score + eer_value
        self.count += 1.0
        return (self.score / self.count).astype(jnp.float32)


def _eer_reference_numpy(label, pred):
    """Plain-numpy EER with the same semantics (sanity check only)."""
    import numpy as np
    label = np.asarray(label, np.float32).ravel()
    pred = np.asarray(pred, np.float32).ravel()
    n_pos = label.sum()
    n_neg = label.size - n_pos
    # thresholds = the scores themselves, descending
    order = np.argsort(-pred)
    thr = pred[order]
    tp = np.array([(label * (pred >= t)).sum() for t in thr])
    fp = np.array([((1 - label) * (pred >= t)).sum() for t in thr])
    tpr = tp / n_pos
    fpr = fp / n_neg
    fnr = 1 - tpr
    i = int(np.argmin(np.abs(fnr - fpr)))
    return float((fpr[i] + fnr[i]) / 2)


if __name__ == "__main__":
    key = jax.random.PRNGKey(0)
    k1, k2, k3, k4 = jax.random.split(key, 4)

    metric = EERPallas()

    # Call 1: flattened N = 128.
    shape1 = (2, 64)
    y_true1 = (jax.random.uniform(k1, shape1) > 0.5).astype(jnp.float32)
    y_true1 = y_true1.at[0, 0].set(1.0).at[0, 1].set(0.0)  # both classes present
    y_pred1 = jax.random.uniform(k2, shape1, dtype=jnp.float32)
    out1 = jax.block_until_ready(metric(y_true1, y_pred1))
    ref1 = _eer_reference_numpy(jax.device_get(y_true1), jax.device_get(y_pred1))
    assert abs(float(out1) - ref1) < 1e-4, (float(out1), ref1)

    # Call 2: flattened N = 150 (exercises padding + threshold-column masking
    # and the running-mean accumulation).
    shape2 = (3, 50)
    y_true2 = (jax.random.uniform(k3, shape2) > 0.5).astype(jnp.float32)
    y_true2 = y_true2.at[0, 0].set(1.0).at[0, 1].set(0.0)
    y_pred2 = jax.random.uniform(k4, shape2, dtype=jnp.float32)
    out2 = jax.block_until_ready(metric(y_true2, y_pred2))
    ref2 = _eer_reference_numpy(jax.device_get(y_true2), jax.device_get(y_pred2))
    assert abs(float(out2) - 0.5 * (ref1 + ref2)) < 1e-4, (float(out2), ref1, ref2)

    print("KERNEL_OK")
</pallas_src>

<mosaic_0001>
module attributes {stable_mosaic.version = 11 : i64} {
  func.func @_tpfp_kernel(%arg0: i32, %arg1: i32, %arg2: memref<8x256xbf16, #tpu.memory_space<vmem>>, %arg3: memref<256x1xf32, #tpu.memory_space<vmem>>, %arg4: memref<1x256xf32, #tpu.memory_space<vmem>>, %arg5: memref<8x256xf32, #tpu.memory_space<vmem>>) attributes {dimension_semantics = [#tpu.dimension_semantics<parallel>, #tpu.dimension_semantics<arbitrary>], iteration_bounds = array<i64: 1, 1>, scalar_prefetch = 0 : i64, scratch_operands = 0 : i64, tpu.core_type = #tpu.core_type<tc>, window_params = [{transform_indices = @transform_0, window_bounds = array<i64: 8, 256>}, {transform_indices = @transform_1, window_bounds = array<i64: 256, 1>}, {transform_indices = @transform_2, window_bounds = array<i64: 1, 256>}, {transform_indices = @transform_3, window_bounds = array<i64: 8, 256>}]} {
    %c0_i32 = arith.constant 0 : i32
    %0 = arith.cmpi eq, %arg1, %c0_i32 : i32
    %1 = arith.extui %0 : i1 to i32
    %c0_i32_0 = arith.constant 0 : i32
    %2 = arith.cmpi ne, %1, %c0_i32_0 : i32
    scf.if %2 {
      %cst_10 = arith.constant 0.000000e+00 : f32
      %16 = vector.broadcast %cst_10 : f32 to vector<8x256xf32>
      %c0_11 = arith.constant 0 : index
      %c0_12 = arith.constant 0 : index
      %17 = vector.load %arg5[%c0_11, %c0_12] : memref<8x256xf32, #tpu.memory_space<vmem>>, vector<8x256xf32>
      tpu.vector_store %arg5[%c0_11, %c0_12], %16 {strides = array<i32>} : memref<8x256xf32, #tpu.memory_space<vmem>>, vector<8x256xf32>,
    } else {
    }
    %c0 = arith.constant 0 : index
    %c0_1 = arith.constant 0 : index
    %3 = vector.load %arg3[%c0, %c0_1] : memref<256x1xf32, #tpu.memory_space<vmem>>, vector<256x1xf32>
    %c0_2 = arith.constant 0 : index
    %c0_3 = arith.constant 0 : index
    %4 = vector.load %arg4[%c0_2, %c0_3] : memref<1x256xf32, #tpu.memory_space<vmem>>, vector<1x256xf32>
    %5 = vector.broadcast %3 : vector<256x1xf32> to vector<256x256xf32>
    %6 = vector.broadcast %4 : vector<1x256xf32> to vector<256x256xf32>
    %7 = arith.cmpf oge, %5, %6 : vector<256x256xf32>
    %8 = arith.extui %7 : vector<256x256xi1> to vector<256x256xi32>
    %9 = arith.sitofp %8 : vector<256x256xi32> to vector<256x256xf32>
    %10 = arith.truncf %9 : vector<256x256xf32> to vector<256x256xbf16>
    %c0_4 = arith.constant 0 : index
    %c0_5 = arith.constant 0 : index
    %11 = vector.load %arg5[%c0_4, %c0_5] : memref<8x256xf32, #tpu.memory_space<vmem>>, vector<8x256xf32>
    %c0_6 = arith.constant 0 : index
    %c0_7 = arith.constant 0 : index
    %12 = vector.load %arg2[%c0_6, %c0_7] : memref<8x256xbf16, #tpu.memory_space<vmem>>, vector<8x256xbf16>
    %cst = arith.constant dense<0.000000e+00> : vector<8x256xf32>
    %13 = tpu.matmul %12, %10, %cst {dimension_numbers = #tpu.dot_dimension_numbers<[1], [0], [0], [1], [0, 0, 1, 1], [], []>} : vector<8x256xbf16>, vector<256x256xbf16>, vector<8x256xf32> -> vector<8x256xf32>
    %14 = arith.addf %11, %13 : vector<8x256xf32>
    %c0_8 = arith.constant 0 : index
    %c0_9 = arith.constant 0 : index
    %15 = vector.load %arg5[%c0_8, %c0_9] : memref<8x256xf32, #tpu.memory_space<vmem>>, vector<8x256xf32>
    tpu.vector_store %arg5[%c0_8, %c0_9], %14 {strides = array<i32>} : memref<8x256xf32, #tpu.memory_space<vmem>>, vector<8x256xf32>,
    return
  }
  func.func @transform_0(%arg0: i32, %arg1: i32) -> (i32, i32) {
    %c0_i32 = arith.constant 0 : i32
    %c0_i32_0 = arith.constant 0 : i32
    return %c0_i32, %arg1 : i32, i32
  }
  func.func @transform_1(%arg0: i32, %arg1: i32) -> (i32, i32) {
    %c0_i32 = arith.constant 0 : i32
    %c0_i32_0 = arith.constant 0 : i32
    return %arg1, %c0_i32 : i32, i32
  }
  func.func @transform_2(%arg0: i32, %arg1: i32) -> (i32, i32) {
    %c0_i32 = arith.constant 0 : i32
    %c0_i32_0 = arith.constant 0 : i32
    return %c0_i32, %arg0 : i32, i32
  }
  func.func @transform_3(%arg0: i32, %arg1: i32) -> (i32, i32) {
    %c0_i32 = arith.constant 0 : i32
    %c0_i32_0 = arith.constant 0 : i32
    return %c0_i32, %arg0 : i32, i32
  }
}

</mosaic_0001>

<bundles_post_ra>
// kernel: _eer_pallas_path.1
= control target key start
LH: loop header
LB: loop body
LE: loop exit
PB: predicated region body
PF: predicated region fallthrough
CT: control target
= control target key end

     0   :  { %v646_v0 = vmov 0   ;;  %v647_v44 = vmov 1.0|1.0   ;;  %s876_s1 = inlined_call_operand.vmem [shape: f32[256,1], index: 1, kind: input, shape index: {}]   ;;  %s877_s2 = inlined_call_operand.vmem [shape: f32[1,256], index: 2, kind: input, shape index: {}]   ;;  %s878_s0 = inlined_call_operand.vmem [shape: bf16[8,256], index: 0, kind: input, shape index: {}]   ;;  %s879_s3 = inlined_call_operand.vmem [shape: f32[8,256], index: 3, kind: output, shape index: {}]  }
   0x1   :  { %645 = vset.pattern.permute.xlu2 %v646_v0  ;;  %644 = vset.pattern.permute.xlu1 %v646_v0  ;;  %v50_v1 = vld [vmem:[%s876_s1 + $0xf0] sm:$0xff]  ;;  %v32_v3 = vld [vmem:[%s876_s1 + $0x60] sm:$0xff]  ;;  %v51_v4 = vld [vmem:[%s876_s1 + $0xf8] sm:$0xff] }
   0x2   :  { %v34_v2 = vld [vmem:[%s876_s1 + $0x70] sm:$0xff]  ;;  %643 = vset.pattern.permute.xlu0 %v646_v0  ;;  %205 = vperm.xlu1 %644, %v50_v1   ;;  %v35_v5 = vld [vmem:[%s876_s1 + $0x78] sm:$0xff]  ;;  %v33_v6 = vld [vmem:[%s876_s1 + $0x68] sm:$0xff] }
   0x3   :  { %125 = vperm.xlu0 %643, %v34_v2   ;;  %115 = vperm.xlu2 %645, %v32_v3   ;;  %v49_v7 = vld [vmem:[%s876_s1 + $0xe8] sm:$0xff]  ;;  %v48_v8 = vld [vmem:[%s876_s1 + $0xe0] sm:$0xff]  ;;  %v30_v9 = vld [vmem:[%s876_s1 + $0x50] sm:$0xff] }
   0x4   :  { %v46_v10 = vld [vmem:[%s876_s1 + $0xd0] sm:$0xff]  ;;  %v31_v11 = vld [vmem:[%s876_s1 + $0x58] sm:$0xff]  ;;  %v29_v13 = vld [vmem:[%s876_s1 + $0x48] sm:$0xff] }
   0x5   :  { %v47_v12 = vld [vmem:[%s876_s1 + $0xd8] sm:$0xff]  ;;  %v44_v14 = vld [vmem:[%s876_s1 + $0xc0] sm:$0xff]  ;;  %v26_v16 = vld [vmem:[%s876_s1 + $0x30] sm:$0xff] }
   0x6   :  { %v28_v15 = vld [vmem:[%s876_s1 + $0x40] sm:$0xff]  ;;  %v45_v17 = vld [vmem:[%s876_s1 + $0xc8] sm:$0xff]  ;;  %v27_v18 = vld [vmem:[%s876_s1 + $0x38] sm:$0xff] }
   0x7   :  { %v43_v19 = vld [vmem:[%s876_s1 + $0xb8] sm:$0xff]  ;;  %v42_v20 = vld [vmem:[%s876_s1 + $0xb0] sm:$0xff]  ;;  %v24_v21 = vld [vmem:[%s876_s1 + $0x20] sm:$0xff] }
   0x8   :  { %v40_v22 = vld [vmem:[%s876_s1 + $0xa0] sm:$0xff]  ;;  %v25_v23 = vld [vmem:[%s876_s1 + $0x28] sm:$0xff]  ;;  %v23_v25 = vld [vmem:[%s876_s1 + $0x18] sm:$0xff] }
   0x9   :  { %v41_v24 = vld [vmem:[%s876_s1 + $0xa8] sm:$0xff]  ;;  %v38_v26 = vld [vmem:[%s876_s1 + $0x90] sm:$0xff]  ;;  %v20_v28 = vld [vmem:[%s876_s1] sm:$0xff] }
   0xa   :  { %210 = vperm.xlu1 %644, %v51_v4   ;;  %v22_v27 = vld [vmem:[%s876_s1 + $0x10] sm:$0xff]  ;;  %v39_v29 = vld [vmem:[%s876_s1 + $0x98] sm:$0xff]  ;;  %v21_v30 = vld [vmem:[%s876_s1 + $0x8] sm:$0xff] }
   0xb   :  { %130 = vperm.xlu0 %643, %v35_v5   ;;  %120 = vperm.xlu2 %645, %v33_v6   ;;  %v37_v31 = vld [vmem:[%s876_s1 + $0x88] sm:$0xff]  ;;  %v36_v32 = vld [vmem:[%s876_s1 + $0x80] sm:$0xff] }
   0xc   :  { %v52_v38 = vld [vmem:[%s877_s2] sm:$0x3] }
   0xd   :  { %v767_v39 = vperm.slane %v52_v38, 0  ;;  %v769_v40 = vperm.slane %v52_v38, 1  ;;  %v444_v0 = vld [vmem:[%s878_s0] sm:$0xff] }
   0xe   :  { %v446_v3 = vunpack.c.l.b16 %v444_v0  ;;  %v447_v6 = vunpack.c.h.b16 %v444_v0 }
  0x10   :  { %v448_v5 = vpack.c.b16 %v446_v3, %v446_v3 }
  0x12   :  { %200 = vperm.xlu1 %644, %v49_v7  }
  0x13   :  { %195 = vperm.xlu0 %643, %v48_v8   ;;  %105 = vperm.xlu2 %645, %v30_v9   ;;  %v449_v9 = vpack.c.b16 %v447_v6, %v447_v6 }
  0x1a   :  { %185 = vperm.xlu1 %644, %v46_v10  }
  0x1b   :  { %110 = vperm.xlu0 %643, %v31_v11   ;;  %190 = vperm.xlu2 %645, %v47_v12  }
  0x22   :  { %100 = vperm.xlu1 %644, %v29_v13  }
  0x23   :  { %175 = vperm.xlu2 %645, %v44_v14   ;;  %95 = vperm.xlu0 %643, %v28_v15  }
  0x2a   :  { %85 = vperm.xlu1 %644, %v26_v16  }
  0x2b   :  { %180 = vperm.xlu0 %643, %v45_v17   ;;  %90 = vperm.xlu2 %645, %v27_v18  }
  0x32   :  { %170 = vperm.xlu1 %644, %v43_v19  }
  0x33   :  { %165 = vperm.xlu0 %643, %v42_v20   ;;  %75 = vperm.xlu2 %645, %v24_v21  }
  0x3a   :  { %155 = vperm.xlu1 %644, %v40_v22  }
  0x3b   :  { %80 = vperm.xlu0 %643, %v25_v23   ;;  %160 = vperm.xlu2 %645, %v41_v24  }
  0x42   :  { %70 = vperm.xlu1 %644, %v23_v25  }
  0x43   :  { %145 = vperm.xlu2 %645, %v38_v26   ;;  %65 = vperm.xlu0 %643, %v22_v27  }
  0x4a   :  { %55 = vperm.xlu1 %644, %v20_v28  }
  0x4b   :  { %150 = vperm.xlu0 %643, %v39_v29   ;;  %60 = vperm.xlu2 %645, %v21_v30  }
  0x52   :  { %140 = vperm.xlu1 %644, %v37_v31  }
  0x53   :  { %135 = vperm.xlu0 %643, %v36_v32  }
  0x5d   :  { %v116_v33 = vpop.permute.xlu2 %115 }
  0x5e   :  { %vm242_vm9 = vcmp.ge.f32.partialorder %v116_v33, %v767_v39  ;;  %vm243_vm13 = vcmp.ge.f32.partialorder %v116_v33, %v769_v40 }
  0x65   :  { %v121_v34 = vpop.permute.xlu2 %120 }
  0x66   :  { %vm244_vm10 = vcmp.ge.f32.partialorder %v121_v34, %v767_v39  ;;  %vm245_vm14 = vcmp.ge.f32.partialorder %v121_v34, %v769_v40 }
  0x6d   :  { %v106_v35 = vpop.permute.xlu2 %105 }
  0x74   :  { %v206_v36 = vpop.permute.xlu1 %205 }
  0x75   :  { %v126_v37 = vpop.permute.xlu0 %125  ;;  %vm278_vm0 = vcmp.ge.f32.partialorder %v206_v36, %v767_v39  ;;  %v191_v43 = vpop.permute.xlu2 %190  ;;  %vm279_vm12 = vcmp.ge.f32.partialorder %v206_v36, %v769_v40 }
  0x76   :  { %vm246_vm2 = vcmp.ge.f32.partialorder %v126_v37, %v767_v39  ;;  %vm247_vm8 = vcmp.ge.f32.partialorder %v126_v37, %v769_v40 }
  0x7c   :  { %v211_v41 = vpop.permute.xlu1 %210 }
  0x7d   :  { %v131_v42 = vpop.permute.xlu0 %130  ;;  %vm280_vm1 = vcmp.ge.f32.partialorder %v211_v41, %v767_v39  ;;  %vm281_vm6 = vcmp.ge.f32.partialorder %v211_v41, %v769_v40  ;;  %v176_v47 = vpop.permute.xlu2 %175 }
  0x7e   :  { %vm248_vm3 = vcmp.ge.f32.partialorder %v131_v42, %v767_v39  ;;  %vm592_vm4 = vmpackc.low %vm280_vm1, %vm278_vm0  ;;  %vm249_vm5 = vcmp.ge.f32.partialorder %v131_v42, %v769_v40 }
  0x7f   :  { %vm576_vm7 = vmpackc.low %vm248_vm3, %vm246_vm2  ;;  %593 = vmatpush.bf16.msk.msra.mxu1 %vm592_vm4, %v647_v44 }
  0x80   :  { %577 = vmatpush.bf16.msk.msra.mxu0 %vm576_vm7, %v647_v44  ;;  %vm608_vm11 = vmpackc.low %vm249_vm5, %vm247_vm8  ;;  %vm272_vm8 = vcmp.ge.f32.partialorder %v191_v43, %v767_v39 }
  0x81   :  { %609 = vmatpush.bf16.msk.msra.mxu2 %vm608_vm11, %v647_v44  ;;  %vm624_vm15 = vmpackc.low %vm281_vm6, %vm279_vm12 }
  0x82   :  { %625 = vmatpush.bf16.msk.msra.mxu3 %vm624_vm15, %v647_v44  ;;  %vm578_vm0 = vmpackc.low %vm244_vm10, %vm242_vm9  ;;  %vm238_vm10 = vcmp.ge.f32.partialorder %v106_v35, %v767_v39  ;;  %vm239_vm15 = vcmp.ge.f32.partialorder %v106_v35, %v769_v40 }
  0x83   :  { %vm610_vm1 = vmpackc.low %vm245_vm14, %vm243_vm13 }
  0x84   :  { %579 = vmatpush.bf16.msk.msra.mxu0 %vm578_vm0, %v647_v44  ;;  %v201_v45 = vpop.permute.xlu1 %200 }
  0x85   :  { %611 = vmatpush.bf16.msk.msra.mxu2 %vm610_vm1, %v647_v44  ;;  %vm276_vm2 = vcmp.ge.f32.partialorder %v201_v45, %v767_v39  ;;  %vm277_vm3 = vcmp.ge.f32.partialorder %v201_v45, %v769_v40  ;;  %v196_v46 = vpop.permute.xlu0 %195  ;;  %vm273_vm1 = vcmp.ge.f32.partialorder %v191_v43, %v769_v40  ;;  %v91_v50 = vpop.permute.xlu2 %90 }
  0x86   :  { %vm274_vm4 = vcmp.ge.f32.partialorder %v196_v46, %v767_v39  ;;  %vm275_vm5 = vcmp.ge.f32.partialorder %v196_v46, %v769_v40 }
  0x87   :  { %vm594_vm7 = vmpackc.low %vm276_vm2, %vm274_vm4 }
  0x88   :  { %595 = vmatpush.bf16.msk.msra.mxu1 %vm594_vm7, %v647_v44  ;;  %vm626_vm6 = vmpackc.low %vm277_vm3, %vm275_vm5 }
  0x89   :  { %627 = vmatpush.bf16.msk.msra.mxu3 %vm626_vm6, %v647_v44 }
  0x8c   :  { %v186_v48 = vpop.permute.xlu1 %185 }
  0x8d   :  { %vm270_vm9 = vcmp.ge.f32.partialorder %v186_v48, %v767_v39  ;;  %v111_v49 = vpop.permute.xlu0 %110  ;;  %vm271_vm11 = vcmp.ge.f32.partialorder %v186_v48, %v769_v40  ;;  %v76_v53 = vpop.permute.xlu2 %75 }
  0x8e   :  { %vm240_vm12 = vcmp.ge.f32.partialorder %v111_v49, %v767_v39  ;;  %vm241_vm13 = vcmp.ge.f32.partialorder %v111_v49, %v769_v40  ;;  %vm596_vm14 = vmpackc.low %vm272_vm8, %vm270_vm9 }
  0x8f   :  { %vm580_vm0 = vmpackc.low %vm240_vm12, %vm238_vm10  ;;  %597 = vmatpush.bf16.msk.msra.mxu1 %vm596_vm14, %v647_v44  ;;  %vm232_vm10 = vcmp.ge.f32.partialorder %v91_v50, %v767_v39 }
  0x90   :  { %581 = vmatpush.bf16.msk.msra.mxu0 %vm580_vm0, %v647_v44  ;;  %vm612_vm2 = vmpackc.low %vm241_vm13, %vm239_vm15  ;;  %vm266_vm13 = vcmp.ge.f32.partialorder %v176_v47, %v767_v39 }
  0x91   :  { %613 = vmatpush.bf16.msk.msra.mxu2 %vm612_vm2, %v647_v44  ;;  %vm628_vm3 = vmpackc.low %vm273_vm1, %vm271_vm11  ;;  %vm233_vm1 = vcmp.ge.f32.partialorder %v91_v50, %v769_v40 }
  0x92   :  { %629 = vmatpush.bf16.msk.msra.mxu3 %vm628_vm3, %v647_v44  ;;  %vm267_vm3 = vcmp.ge.f32.partialorder %v176_v47, %v769_v40 }
  0x94   :  { %v101_v51 = vpop.permute.xlu1 %100 }
  0x95   :  { %vm236_vm4 = vcmp.ge.f32.partialorder %v101_v51, %v767_v39  ;;  %vm237_vm5 = vcmp.ge.f32.partialorder %v101_v51, %v769_v40  ;;  %v96_v52 = vpop.permute.xlu0 %95  ;;  %v161_v58 = vpop.permute.xlu2 %160 }
  0x96   :  { %vm234_vm7 = vcmp.ge.f32.partialorder %v96_v52, %v767_v39  ;;  %vm235_vm6 = vcmp.ge.f32.partialorder %v96_v52, %v769_v40 }
  0x97   :  { %vm582_vm8 = vmpackc.low %vm236_vm4, %vm234_vm7 }
  0x98   :  { %583 = vmatpush.bf16.msk.msra.mxu0 %vm582_vm8, %v647_v44  ;;  %vm614_vm9 = vmpackc.low %vm237_vm5, %vm235_vm6 }
  0x99   :  { %615 = vmatpush.bf16.msk.msra.mxu2 %vm614_vm9, %v647_v44 }
  0x9c   :  { %v86_v54 = vpop.permute.xlu1 %85 }
  0x9d   :  { %v181_v55 = vpop.permute.xlu0 %180  ;;  %vm230_vm11 = vcmp.ge.f32.partialorder %v86_v54, %v767_v39  ;;  %vm231_vm12 = vcmp.ge.f32.partialorder %v86_v54, %v769_v40  ;;  %v146_v61 = vpop.permute.xlu2 %145 }
  0x9e   :  { %vm268_vm14 = vcmp.ge.f32.partialorder %v181_v55, %v767_v39  ;;  %vm269_vm15 = vcmp.ge.f32.partialorder %v181_v55, %v769_v40  ;;  %vm584_vm0 = vmpackc.low %vm232_vm10, %vm230_vm11 }
  0x9f   :  { %585 = vmatpush.bf16.msk.msra.mxu0 %vm584_vm0, %v647_v44  ;;  %vm598_vm2 = vmpackc.low %vm268_vm14, %vm266_vm13  ;;  %vm226_vm14 = vcmp.ge.f32.partialorder %v76_v53, %v767_v39 }
  0xa0   :  { %599 = vmatpush.bf16.msk.msra.mxu1 %vm598_vm2, %v647_v44  ;;  %vm616_vm4 = vmpackc.low %vm233_vm1, %vm231_vm12  ;;  %vm260_vm12 = vcmp.ge.f32.partialorder %v161_v58, %v767_v39 }
  0xa1   :  { %617 = vmatpush.bf16.msk.msra.mxu2 %vm616_vm4, %v647_v44  ;;  %vm630_vm5 = vmpackc.low %vm269_vm15, %vm267_vm3  ;;  %vm227_vm3 = vcmp.ge.f32.partialorder %v76_v53, %v769_v40 }
  0xa2   :  { %631 = vmatpush.bf16.msk.msra.mxu3 %vm630_vm5, %v647_v44  ;;  %vm261_vm5 = vcmp.ge.f32.partialorder %v161_v58, %v769_v40 }
  0xa4   :  { %v171_v56 = vpop.permute.xlu1 %170 }
  0xa5   :  { %v166_v57 = vpop.permute.xlu0 %165  ;;  %vm264_vm7 = vcmp.ge.f32.partialorder %v171_v56, %v767_v39  ;;  %vm265_vm6 = vcmp.ge.f32.partialorder %v171_v56, %v769_v40  ;;  %v61_v1 = vpop.permute.xlu2 %60 }
  0xa6   :  { %vm262_vm8 = vcmp.ge.f32.partialorder %v166_v57, %v767_v39  ;;  %vm263_vm9 = vcmp.ge.f32.partialorder %v166_v57, %v769_v40 }
  0xa7   :  { %vm600_vm10 = vmpackc.low %vm264_vm7, %vm262_vm8 }
  0xa8   :  { %601 = vmatpush.bf16.msk.msra.mxu1 %vm600_vm10, %v647_v44  ;;  %vm632_vm11 = vmpackc.low %vm265_vm6, %vm263_vm9 }
  0xa9   :  { %633 = vmatpush.bf16.msk.msra.mxu3 %vm632_vm11, %v647_v44 }
  0xac   :  { %v156_v59 = vpop.permute.xlu1 %155 }
  0xad   :  { %vm258_vm13 = vcmp.ge.f32.partialorder %v156_v59, %v767_v39  ;;  %v81_v60 = vpop.permute.xlu0 %80  ;;  %vm259_vm15 = vcmp.ge.f32.partialorder %v156_v59, %v769_v40 }
  0xae   :  { %vm228_vm0 = vcmp.ge.f32.partialorder %v81_v60, %v767_v39  ;;  %vm229_vm1 = vcmp.ge.f32.partialorder %v81_v60, %v769_v40  ;;  %vm602_vm2 = vmpackc.low %vm260_vm12, %vm258_vm13 }
  0xaf   :  { %vm586_vm4 = vmpackc.low %vm228_vm0, %vm226_vm14  ;;  %603 = vmatpush.bf16.msk.msra.mxu1 %vm602_vm2, %v647_v44  ;;  %vm220_vm14 = vcmp.ge.f32.partialorder %v61_v1, %v767_v39 }
  0xb0   :  { %587 = vmatpush.bf16.msk.msra.mxu0 %vm586_vm4, %v647_v44  ;;  %vm618_vm7 = vmpackc.low %vm229_vm1, %vm227_vm3  ;;  %vm254_vm1 = vcmp.ge.f32.partialorder %v146_v61, %v767_v39 }
  0xb1   :  { %619 = vmatpush.bf16.msk.msra.mxu2 %vm618_vm7, %v647_v44  ;;  %vm634_vm6 = vmpackc.low %vm261_vm5, %vm259_vm15  ;;  %vm221_vm5 = vcmp.ge.f32.partialorder %v61_v1, %v769_v40 }
  0xb2   :  { %635 = vmatpush.bf16.msk.msra.mxu3 %vm634_vm6, %v647_v44  ;;  %vm255_vm6 = vcmp.ge.f32.partialorder %v146_v61, %v769_v40 }
  0xb4   :  { %v71_v62 = vpop.permute.xlu1 %70 }
  0xb5   :  { %vm224_vm8 = vcmp.ge.f32.partialorder %v71_v62, %v767_v39  ;;  %vm225_vm9 = vcmp.ge.f32.partialorder %v71_v62, %v769_v40  ;;  %v66_v63 = vpop.permute.xlu0 %65 }
  0xb6   :  { %vm222_vm10 = vcmp.ge.f32.partialorder %v66_v63, %v767_v39  ;;  %vm223_vm11 = vcmp.ge.f32.partialorder %v66_v63, %v769_v40 }
  0xb7   :  { %vm588_vm12 = vmpackc.low %vm224_vm8, %vm222_vm10 }
  0xb8   :  { %589 = vmatpush.bf16.msk.msra.mxu0 %vm588_vm12, %v647_v44  ;;  %vm620_vm13 = vmpackc.low %vm225_vm9, %vm223_vm11 }
  0xb9   :  { %621 = vmatpush.bf16.msk.msra.mxu2 %vm620_vm13, %v647_v44 }
  0xbc   :  { %v56_v2 = vpop.permute.xlu1 %55 }
  0xbd   :  { %v151_v4 = vpop.permute.xlu0 %150  ;;  %vm218_vm15 = vcmp.ge.f32.partialorder %v56_v2, %v767_v39  ;;  %vm219_vm0 = vcmp.ge.f32.partialorder %v56_v2, %v769_v40 }
  0xbe   :  { %vm256_vm2 = vcmp.ge.f32.partialorder %v151_v4, %v767_v39  ;;  %vm257_vm3 = vcmp.ge.f32.partialorder %v151_v4, %v769_v40  ;;  %vm590_vm4 = vmpackc.low %vm220_vm14, %vm218_vm15 }
  0xbf   :  { %591 = vmatpush.bf16.msk.msra.mxu0 %vm590_vm4, %v647_v44  ;;  %vm604_vm7 = vmpackc.low %vm256_vm2, %vm254_vm1 }
  0xc0   :  { %605 = vmatpush.bf16.msk.msra.mxu1 %vm604_vm7, %v647_v44  ;;  %vm622_vm8 = vmpackc.low %vm221_vm5, %vm219_vm0 }
  0xc1   :  { %623 = vmatpush.bf16.msk.msra.mxu2 %vm622_vm8, %v647_v44  ;;  %vm636_vm9 = vmpackc.low %vm257_vm3, %vm255_vm6 }
  0xc2   :  { %637 = vmatpush.bf16.msk.msra.mxu3 %vm636_vm9, %v647_v44  ;;  %460 = vmatmul.bf16.vlgmr.msra.gmra.mxu0 %v448_v5 }
  0xc4   :  { %486 = vmatmul.bf16.vlgmr.msra.gmra.mxu2 %v448_v5  ;;  %v141_v7 = vpop.permute.xlu1 %140 }
  0xc5   :  { %v136_v8 = vpop.permute.xlu0 %135  ;;  %vm252_vm10 = vcmp.ge.f32.partialorder %v141_v7, %v767_v39  ;;  %vm253_vm11 = vcmp.ge.f32.partialorder %v141_v7, %v769_v40 }
  0xc6   :  { %vm250_vm12 = vcmp.ge.f32.partialorder %v136_v8, %v767_v39  ;;  %vm251_vm13 = vcmp.ge.f32.partialorder %v136_v8, %v769_v40 }
  0xc7   :  { %vm606_vm14 = vmpackc.low %vm252_vm10, %vm250_vm12 }
  0xc8   :  { %vm638_vm15 = vmpackc.low %vm253_vm11, %vm251_vm13  ;;  %607 = vmatpush.bf16.msk.msra.mxu1 %vm606_vm14, %v647_v44 }
  0xc9   :  { %639 = vmatpush.bf16.msk.msra.mxu3 %vm638_vm15, %v647_v44 }
  0xcb   :  { %473 = vmatmul.bf16.vlgmr.msra.gmra.mxu1 %v449_v9 }
  0xcc   :  { %499 = vmatmul.bf16.vlgmr.msra.gmra.mxu3 %v449_v9 }
 0x13f   :  { %v461_v10 = vpop.f32.mrf.mxu0 }
 0x147   :  { %v487_v11 = vpop.f32.mrf.mxu2  ;;  %v463_v12 = vpop.f32.mrf.mxu0 }
 0x148   :  { %v474_v13 = vpop.f32.mrf.mxu1 }
 0x149   :  { %v475_v14 = vadd.f32 %v474_v13, %v461_v10 }
 0x14b   :  { %506 = vst [vmem:[%s879_s3] sm:$0xff] %v475_v14 }
 0x14f   :  { %v489_v15 = vpop.f32.mrf.mxu2  ;;  %v500_v16 = vpop.f32.mrf.mxu3 }
 0x150   :  { %v501_v17 = vadd.f32 %v500_v16, %v487_v11  ;;  %v476_v18 = vpop.f32.mrf.mxu1 }
 0x152   :  { %507 = vst [vmem:[%s879_s3 + $0x8] sm:$0xff] %v501_v17 }
 0x157   :  { %v502_v19 = vpop.f32.mrf.mxu3 }

</bundles_post_ra>
